<compile_context>
chip_gen: v5e
topology: v5e:2x2
jax: 0.10.0
libtpu: 0.0.40
codegen_flags: <defaults>
</compile_context>

<pallas_src>
import jax
import jax.numpy as jnp
from jax import lax
from jax.experimental import pallas as pl
from jax.experimental.pallas import tpu as pltpu


def _attention_kernel(x_ref, w_ref, out_ref, attn_ref):
    # x_ref:    (BB, T, D)  VMEM tile of inputs (native dtype)
    # w_ref:    (1, D)      VMEM, resident across grid steps (constant index_map)
    # out_ref:  (BB, D)
    # attn_ref: (BB, T)
    x = x_ref[...]                                    # (BB, T, D), native dtype
    w = w_ref[...].astype(x.dtype)                    # (1, D)

    # scores[b, t] = sum_d x[b, t, d] * w[0, d]
    # VPU multiply in native dtype + lane (D-axis) reduce with f32 accumulation.
    # No full-tile f32 temporary is materialized.
    scores = jnp.sum(x * w, axis=-1, dtype=jnp.float32)          # (BB, T) f32, lane-major

    # Numerically stable softmax over the sequence (lane) axis -- stays lane-major.
    m = jnp.max(scores, axis=-1, keepdims=True)                  # (BB, 1)
    e = jnp.exp(scores - m)                                      # (BB, T)
    denom = jnp.sum(e, axis=-1, keepdims=True)                   # (BB, 1), >= 1
    r = pl.reciprocal(denom, approx=True)                        # EUP vrcp
    r = r * (2.0 - denom * r)                                    # one Newton step -> f32 accuracy
    weights = e * r                                              # (BB, T) f32

    # out[b, :] = weights[b, :] @ x[b, :, :]
    # Batched (1, T) x (T, D) matvec on the otherwise-idle MXU (flash-attention P.V
    # pattern), f32 accumulation; avoids the full (BB, T, D) f32 VPU temporary.
    out = lax.dot_general(
        weights.astype(x.dtype)[:, None, :],                     # (BB, 1, T)
        x,                                                       # (BB, T, D)
        dimension_numbers=(((2,), (1,)), ((0,), (0,))),
        preferred_element_type=jnp.float32,
        precision=lax.Precision.HIGHEST,
    )                                                            # (BB, 1, D)

    out_ref[...] = out[:, 0, :].astype(out_ref.dtype)
    attn_ref[...] = weights.astype(attn_ref.dtype)


def _round_up(x, m):
    return ((x + m - 1) // m) * m


def _vmem_capacity_bytes():
    """Per-core VMEM capacity; conservative (v7x, 64 MiB) fallback if the query fails."""
    try:
        return int(pltpu.get_tpu_info().vmem_capacity_bytes)
    except Exception:
        return 64 * 1024 * 1024


def _pick_batch_block(B, T, D, itemsize, target_bytes):
    """Largest batch block (multiple of 8, or full B when B <= 8) whose x tile fits the
    per-generation byte target, while keeping >= 2 grid steps (>= 4 for large B) so the
    'parallel' axis can shard across TensorCores and prefetch has work to overlap."""
    if B <= 8:
        return B
    per_row = max(1, T * D * itemsize)
    bb = max(8, int(target_bytes // per_row) // 8 * 8)
    min_steps = 4 if B >= 32 else 2
    cap = max(8, _round_up(pl.cdiv(B, min_steps), 8))
    bb = min(bb, cap)
    if bb >= B:
        return B
    return int(bb)


def attention_layer(inputs, weight):
    """inputs: (B, T, D), weight: (1, D) -> (output (B, D), attn_weights (B, T))."""
    B, T, D = inputs.shape
    assert weight.shape == (1, D)

    itemsize = jnp.dtype(inputs.dtype).itemsize
    vmem_cap = _vmem_capacity_bytes()

    # Generation-aware x-tile byte target: ~1/6 of per-core VMEM.
    target_bytes = max(1 << 20, vmem_cap // 6)
    bb = _pick_batch_block(B, T, D, itemsize, target_bytes)
    grid = (pl.cdiv(B, bb),)

    # VMEM budget: double-buffered x tile + in-kernel temporaries (budgeted at ~1.5x the
    # tile in f32 -- v5e promotes elementwise math to f32) + double-buffered outputs +
    # weight + headroom; clamped to this chip's capacity.
    x_tile_bytes = bb * T * D * itemsize
    temp_bytes = (3 * bb * T * D * 4) // 2
    out_tile_bytes = (bb * D + bb * T) * itemsize
    vmem_limit = 2 * x_tile_bytes + temp_bytes + 4 * out_tile_bytes + D * 4 + (2 << 20)
    vmem_limit = max(16 << 20, min(int(vmem_limit), vmem_cap - (4 << 20)))

    # TODO(synk): add a T-tiled online-softmax path (reduction grid axis marked
    # "arbitrary") for shapes where even an (8, T, D) slab exceeds the VMEM budget.
    if 2 * x_tile_bytes + temp_bytes > vmem_cap - (8 << 20):
        raise ValueError(
            f"x tile (bb={bb}, T={T}, D={D}) does not fit VMEM (capacity={vmem_cap}); "
            "a T-tiled online-softmax path is required for this shape.")

    out_shapes = (
        jax.ShapeDtypeStruct((B, D), inputs.dtype),
        jax.ShapeDtypeStruct((B, T), inputs.dtype),
    )

    return pl.pallas_call(
        _attention_kernel,
        out_shape=out_shapes,
        grid=grid,
        in_specs=[
            # x: batch-tiled, full (T, D) slab per tile (last two dims full extent).
            pl.BlockSpec((bb, T, D), lambda b: (b, 0, 0)),
            # weight: same block every grid step -> stays VMEM-resident, no re-DMA.
            pl.BlockSpec((1, D), lambda b: (0, 0)),
        ],
        out_specs=(
            pl.BlockSpec((bb, D), lambda b: (b, 0)),
            pl.BlockSpec((bb, T), lambda b: (b, 0)),
        ),
        compiler_params=pltpu.CompilerParams(
            dimension_semantics=("parallel",),   # megacore-shardable batch axis
            vmem_limit_bytes=vmem_limit,
        ),
    )(inputs, weight)


def attention_layer_ref(inputs, weight):
    """Pure-JAX reference mirroring the PyTorch forward."""
    scores = jnp.einsum('btd,od->bt', inputs, weight,
                        precision=lax.Precision.HIGHEST)        # (B, T)
    attn = jax.nn.softmax(scores, axis=1)                       # (B, T)
    out = jnp.sum(inputs * attn[..., None], axis=1)             # (B, D)
    return out, attn


if __name__ == "__main__":
    B, T, D = 2, 8, 32  # batch, seq, hidden (input_size = D)

    key = jax.random.PRNGKey(0)
    k_x, k_w = jax.random.split(key)

    inputs = jax.random.normal(k_x, (B, T, D), dtype=jnp.float32)
    # nn.Linear(input_size, 1, bias=False).weight has shape (1, input_size)
    bound = 1.0 / (D ** 0.5)
    weight = jax.random.uniform(k_w, (1, D), minval=-bound, maxval=bound,
                                dtype=jnp.float32)

    out, attn = attention_layer(inputs, weight)
    out, attn = jax.block_until_ready((out, attn))

    out_ref, attn_ref = attention_layer_ref(inputs, weight)
    assert out.shape == (B, D) and attn.shape == (B, T)
    assert jnp.allclose(out, out_ref, atol=1e-5, rtol=1e-5)
    assert jnp.allclose(attn, attn_ref, atol=1e-5, rtol=1e-5)
    assert jnp.allclose(jnp.sum(attn, axis=1), 1.0, atol=1e-5)

    print("KERNEL_OK")
</pallas_src>

<mosaic_0001>
module attributes {stable_mosaic.version = 11 : i64} {
  func.func @_attention_kernel(%arg0: i32, %arg1: memref<2x8x32xf32, #tpu.memory_space<vmem>>, %arg2: memref<1x32xf32, #tpu.memory_space<vmem>>, %arg3: memref<2x32xf32, #tpu.memory_space<vmem>>, %arg4: memref<2x8xf32, #tpu.memory_space<vmem>>) attributes {dimension_semantics = [#tpu.dimension_semantics<parallel>], iteration_bounds = array<i64: 1>, scalar_prefetch = 0 : i64, scratch_operands = 0 : i64, tpu.core_type = #tpu.core_type<tc>, window_params = [{transform_indices = @transform_0, window_bounds = array<i64: 2, 8, 32>}, {pipeline_mode = #tpu.pipeline_mode<synchronous>, transform_indices = @transform_1, window_bounds = array<i64: 1, 32>}, {transform_indices = @transform_2, window_bounds = array<i64: 2, 32>}, {transform_indices = @transform_3, window_bounds = array<i64: 2, 8>}]} {
    %c0 = arith.constant 0 : index
    %c0_0 = arith.constant 0 : index
    %c0_1 = arith.constant 0 : index
    %0 = vector.load %arg1[%c0, %c0_0, %c0_1] : memref<2x8x32xf32, #tpu.memory_space<vmem>>, vector<2x8x32xf32>
    %c0_2 = arith.constant 0 : index
    %c0_3 = arith.constant 0 : index
    %1 = vector.load %arg2[%c0_2, %c0_3] : memref<1x32xf32, #tpu.memory_space<vmem>>, vector<1x32xf32>
    %2 = vector.shape_cast %1 : vector<1x32xf32> to vector<1x1x32xf32>
    %3 = vector.broadcast %2 : vector<1x1x32xf32> to vector<2x8x32xf32>
    %4 = arith.mulf %0, %3 : vector<2x8x32xf32>
    %cst = arith.constant dense<0.000000e+00> : vector<2x8xf32>
    %5 = vector.multi_reduction <add>, %4, %cst [2] : vector<2x8x32xf32> to vector<2x8xf32>
    %cst_4 = arith.constant dense<0xFF800000> : vector<2xf32>
    %6 = vector.multi_reduction <maximumf>, %5, %cst_4 [1] : vector<2x8xf32> to vector<2xf32>
    %7 = vector.shape_cast %6 : vector<2xf32> to vector<2x1xf32>
    %8 = vector.broadcast %7 : vector<2x1xf32> to vector<2x8xf32>
    %9 = arith.subf %5, %8 : vector<2x8xf32>
    %10 = math.exp %9 : vector<2x8xf32>
    %cst_5 = arith.constant dense<0.000000e+00> : vector<2xf32>
    %11 = vector.multi_reduction <add>, %10, %cst_5 [1] : vector<2x8xf32> to vector<2xf32>
    %12 = vector.shape_cast %11 : vector<2xf32> to vector<2x1xf32>
    %13 = tpu.reciprocal %12 {approx = true} : vector<2x1xf32> -> vector<2x1xf32>
    %14 = arith.mulf %12, %13 : vector<2x1xf32>
    %cst_6 = arith.constant 2.000000e+00 : f32
    %15 = vector.broadcast %cst_6 : f32 to vector<2x1xf32>
    %16 = arith.subf %15, %14 : vector<2x1xf32>
    %17 = arith.mulf %13, %16 : vector<2x1xf32>
    %18 = vector.broadcast %17 : vector<2x1xf32> to vector<2x8xf32>
    %19 = arith.mulf %10, %18 : vector<2x8xf32>
    %20 = vector.shape_cast %19 : vector<2x8xf32> to vector<2x1x8xf32>
    %cst_7 = arith.constant dense<0.000000e+00> : vector<2x1x32xf32>
    %21 = tpu.matmul %20, %0, %cst_7 {dimension_numbers = #tpu.dot_dimension_numbers<[2], [1], [1], [2], [0, 0, 0, 1, 1, 2], [0], [0]>, precision = #tpu.contract_precision<fp32>} : vector<2x1x8xf32>, vector<2x8x32xf32>, vector<2x1x32xf32> -> vector<2x1x32xf32>
    %22 = vector.shape_cast %21 : vector<2x1x32xf32> to vector<2x32xf32>
    %c0_8 = arith.constant 0 : index
    %c0_9 = arith.constant 0 : index
    %23 = vector.load %arg3[%c0_8, %c0_9] : memref<2x32xf32, #tpu.memory_space<vmem>>, vector<2x32xf32>
    tpu.vector_store %arg3[%c0_8, %c0_9], %22 {strides = array<i32>} : memref<2x32xf32, #tpu.memory_space<vmem>>, vector<2x32xf32>,
    %c0_10 = arith.constant 0 : index
    %c0_11 = arith.constant 0 : index
    %24 = vector.load %arg4[%c0_10, %c0_11] : memref<2x8xf32, #tpu.memory_space<vmem>>, vector<2x8xf32>
    tpu.vector_store %arg4[%c0_10, %c0_11], %19 {strides = array<i32>} : memref<2x8xf32, #tpu.memory_space<vmem>>, vector<2x8xf32>,
    return
  }
  func.func @transform_0(%arg0: i32) -> (i32, i32, i32) {
    %c0_i32 = arith.constant 0 : i32
    %c0_i32_0 = arith.constant 0 : i32
    %c0_i32_1 = arith.constant 0 : i32
    return %arg0, %c0_i32, %c0_i32_0 : i32, i32, i32
  }
  func.func @transform_1(%arg0: i32) -> (i32, i32) {
    %c0_i32 = arith.constant 0 : i32
    %c0_i32_0 = arith.constant 0 : i32
    %c0_i32_1 = arith.constant 0 : i32
    return %c0_i32, %c0_i32_0 : i32, i32
  }
  func.func @transform_2(%arg0: i32) -> (i32, i32) {
    %c0_i32 = arith.constant 0 : i32
    %c0_i32_0 = arith.constant 0 : i32
    return %arg0, %c0_i32 : i32, i32
  }
  func.func @transform_3(%arg0: i32) -> (i32, i32) {
    %c0_i32 = arith.constant 0 : i32
    %c0_i32_0 = arith.constant 0 : i32
    return %arg0, %c0_i32 : i32, i32
  }
}

</mosaic_0001>

<bundles_post_ra>
// kernel: tpu_custom_call.1
= control target key start
LH: loop header
LB: loop body
LE: loop exit
PB: predicated region body
PF: predicated region fallthrough
CT: control target
= control target key end

     0   :  { %9 = vsyncpa [#allocation3], 0  ;;  %s647_s0 = inlined_call_operand.hbm [shape: f32[2,8,32], index: 0, kind: input, shape index: {}]   ;;  %s648_s1 = inlined_call_operand.hbm [shape: f32[1,32], index: 1, kind: input, shape index: {}]   ;;  %s649_s2 = inlined_call_operand.hbm [shape: f32[2,32], index: 2, kind: output, shape index: {0}]   ;;  %s650_s3 = inlined_call_operand.hbm [shape: f32[2,8], index: 3, kind: output, shape index: {1}]  }
   0x1   :  { %10 = vsyncpa [#allocation6], 0 }
   0x2   :  { %11 = vsyncpa [#allocation4], 0 }
   0x3   :  { %12 = vsyncpa [#allocation9], 0  ;;  %s17_s14 = sshll.u32 %s647_s0, 4  ;;  %s582_s15 = smov [#allocation2]   ;;  %s18_s14 = int_to_ptr.hbm [resolvable:$true] %s17_s14 }
   0x4   :  { %s19_s16 = sshll.u32 %s582_s15, 4  ;;  %s31_s19 = sshll.u32 %s648_s1, 4  ;;  %s20_s16 = int_to_ptr.vmem [resolvable:$true] %s19_s16  ;;  %s32_s19 = int_to_ptr.hbm [resolvable:$true] %s31_s19 }
   0x5   :  { %s583_s20 = smov 128   ;;  %s584_s21 = smov 8  }
   0x6   :  { %25 = dma.hbm_to_vmem [thread:$0]  %s18_s14, 256, %s20_s16, [#allocation3], %s583_s20, %s583_s20, %s584_s21  }
   0x7   :  { %s585_s22 = smov [#allocation5]  }
   0x8   :  { %s33_s23 = sshll.u32 %s585_s22, 4  ;;  %s34_s23 = int_to_ptr.vmem [resolvable:$true] %s33_s23 }
   0x9   :  { %36 = dma.hbm_to_vmem [thread:$0]  %s32_s19, 16, %s34_s23, [#allocation6]  }
   0xa   :  { %574 = dma.done.wait [#allocation3], 256  }
   0xb   :  { %575 = vsyncadd [#allocation3], 4294967040 }
   0xc   :  { %576 = dma.done.wait [#allocation6], 16  }
   0xd   :  { %577 = vsyncadd [#allocation6], 4294967280  ;;  %v45_v0 = vld [vmem:[#allocation2] sm:$0xff]  ;;  %v471_v1 = vld [vmem:[#allocation5] ss:$0 sm:$0xff]  ;;  %vm53_vm0 = vcmask 261120   ;;  %v62_v9 = vlaneseq }
   0xe   :  { %v615_v2 = vand.u32 4294901760, %v45_v0  ;;  %v51_v3 = vmul.f32 %v471_v1, %v45_v0  ;;  %v617_v4 = vld [vmem:[#allocation2 + $0x8] sm:$0xff]  ;;  %vm66_vm1 = vcmask 1041409   ;;  %vm69_vm2 = vcmask 58368   ;;  %s587_s0 = smov [#allocation8]   ;;  %s445_s26 = sshll.u32 %s650_s3, 4  ;;  %s446_s26 = int_to_ptr.hbm [resolvable:$true] %s445_s26 }
   0xf   :  { %v52_v6 = vmul.f32 %v471_v1, %v617_v4  ;;  %v622_v10 = vand.u32 127, %v62_v9  ;;  %v586_v16 = vmov 0   ;;  %v286_v42 = vand.u32 4294901760, %v617_v4  ;;  %s443_s1 = sshll.u32 %s587_s0, 4  ;;  %s588_s3 = smov [#allocation7]   ;;  %s444_s1 = int_to_ptr.vmem [resolvable:$true] %s443_s1 }
  0x10   :  { %210 = vmatpush.msra.mxu3 %v615_v2  ;;  %134 = vmatpush.msra.mxu0 %v615_v2  ;;  %v54_v5 = vsel %vm53_vm0, %v51_v3, 0.0  ;;  %v160_v41 = vsub.f32 %v45_v0, %v615_v2  ;;  %vm115_vm3 = vcmask 64512   ;;  %s432_s27 = sshll.u32 %s588_s3, 4  ;;  %s434_s30 = sshll.u32 %s649_s2, 4  ;;  %vm422_vm4 = vcmask 254976   ;;  %s433_s27 = int_to_ptr.vmem [resolvable:$true] %s432_s27  ;;  %s435_s30 = int_to_ptr.hbm [resolvable:$true] %s434_s30 }
  0x11   :  { %55 = vadd.xlane.f32.xlu0 %v54_v5  ;;  %v57_v7 = vsel %vm53_vm0, %v52_v6, 0.0  ;;  %469 = vset.pattern.permute.xlu2 %v586_v16  ;;  %v313_v46 = vsub.f32 %v617_v4, %v286_v42 }
  0x12   :  { %468 = vset.pattern.permute.xlu1 %v586_v16  ;;  %470 = vset.pattern.permute.xlu0 %v586_v16  ;;  %v161_v43 = vand.u32 4294901760, %v160_v41 }
  0x13   :  { %187 = vmatpush.msra.mxu2 %v160_v41  ;;  %v314_v47 = vand.u32 4294901760, %v313_v46 }
  0x14   :  { %v162_v44 = vsub.f32 %v160_v41, %v161_v43  ;;  %236 = vmatpush.msrb.mxu0 %v161_v43 }
  0x15   :  { %287 = vmatpush.msrb.mxu2 %v286_v42  ;;  %v315_v48 = vsub.f32 %v313_v46, %v314_v47 }
  0x16   :  { %v163_v45 = vand.u32 4294901760, %v162_v44 }
  0x17   :  { %v316_v49 = vand.u32 4294901760, %v315_v48 }
  0x18   :  { %164 = vmatpush.msra.mxu1 %v163_v45 }
  0x19   :  { %58 = vadd.xlane.f32.xlu0 %v57_v7  ;;  %317 = vmatpush.msrb.mxu3 %v316_v49 }
  0x1a   :  { %258 = vmatpush.msrb.mxu1 %v615_v2 }
  0x84   :  { %v56_v8 = vpop.xlane.xlu0 %55 }
  0x85   :  { %v64_v12 = vperm.slane %v56_v8, %v622_v10 }
  0x8c   :  { %v59_v11 = vpop.xlane.xlu0 %58 }
  0x8d   :  { %v65_v13 = vperm.slane %v59_v11, %v622_v10 }
  0x8f   :  { %v67_v14 = vsel %vm66_vm1, %v65_v13, %v64_v12 }
  0x90   :  { %v70_v15 = vsel %vm69_vm2, %v67_v14, -inf }
  0x91   :  { %71 = vmax.xlane.f32.xlu1 %v70_v15 }
 0x104   :  { %v72_v17 = vpop.xlane.xlu1 %71 }
 0x105   :  { %v74_v18 = vperm.slane %v72_v17, 0  ;;  %v75_v19 = vperm.slane %v72_v17, 1 }
 0x107   :  { %v78_v20 = vsub.f32 %v56_v8, %v74_v18  ;;  %v79_v21 = vsub.f32 %v59_v11, %v75_v19 }
 0x109   :  { %v80_v22 = vmul.f32 1.442695, %v78_v20  ;;  %v82_v23 = vmul.f32 1.442695, %v79_v21 }
 0x10b   :  { %472 = vpow2.f32 %v80_v22 }
 0x10c   :  { %474 = vpow2.f32 %v82_v23 }
 0x111   :  { %v473_v24 = vpop.eup %472 }
 0x112   :  { %v475_v25 = vpop.eup %474  ;;  %87 = vperm.xlu1 %468, %v473_v24  }
 0x113   :  { %90 = vperm.xlu2 %469, %v475_v25  }
 0x16d   :  { %v91_v26 = vpop.permute.xlu2 %90 }
 0x16e   :  { %v93_v28 = vperm.slane %v91_v26, %v622_v10 }
 0x184   :  { %v88_v27 = vpop.permute.xlu1 %87 }
 0x185   :  { %v92_v29 = vperm.slane %v88_v27, %v622_v10 }
 0x187   :  { %v94_v30 = vsel %vm66_vm1, %v93_v28, %v92_v29 }
 0x188   :  { %v96_v31 = vsel %vm69_vm2, %v94_v30, 0.0 }
 0x189   :  { %97 = vadd.xlane.f32.xlu2 %v96_v31 }
 0x1fc   :  { %v98_v32 = vpop.xlane.xlu2 %97 }
 0x1fd   :  { %476 = vrcp.f32 %v98_v32 }
 0x203   :  { %v477_v33 = vpop.eup %476 }
 0x204   :  { %v100_v34 = vmul.f32 %v477_v33, %v98_v32 }
 0x206   :  { %v101_v35 = vsub.f32 2.0, %v100_v34 }
 0x208   :  { %v102_v36 = vmul.f32 %v477_v33, %v101_v35 }
 0x20a   :  { %v104_v37 = vperm.slane %v102_v36, 0  ;;  %v105_v38 = vperm.slane %v102_v36, 1 }
 0x20c   :  { %v109_v39 = vmul.f32 %v475_v25, %v105_v38  ;;  %v108_v40 = vmul.f32 %v473_v24, %v104_v37 }
 0x20e   :  { %266 = vperm.xlu1 %468, %v109_v39   ;;  %112 = vperm.xlu0 %470, %v108_v40  }
 0x280   :  { %v267_v50 = vpop.permute.xlu1 %266  ;;  %v113_v51 = vpop.permute.xlu0 %112 }
 0x281   :  { %v268_v52 = vperm.slane %v267_v50, %v622_v10  ;;  %v114_v53 = vperm.slane %v113_v51, %v622_v10 }
 0x283   :  { %v269_v54 = vsel %vm115_vm3, %v268_v52, 0  ;;  %v116_v55 = vsel %vm115_vm3, %v114_v53, 0  ;;  %v424_v56 = vsel %vm66_vm1, %v268_v52, %v114_v53 }
 0x284   :  { %v288_v57 = vand.u32 4294901760, %v269_v54  ;;  %v135_v58 = vand.u32 4294901760, %v116_v55  ;;  %426 = vst.msk [vmem:[#allocation8] sm:$0x3] %vm69_vm2, %v424_v56 }
 0x285   :  { %448 = dma.vmem_to_hbm [thread:$0]  %s444_s1, 32, %s446_s26, [#allocation9]  }
 0x286   :  { %v289_v59 = vsub.f32 %v269_v54, %v288_v57  ;;  %v136_v60 = vsub.f32 %v116_v55, %v135_v58  ;;  %166 = vmatmul.f32.vlgmr.msra.gmra.mxu1 %v135_v58 }
 0x287   :  { %363 = vmatpush.msra.mxu1 %v286_v42 }
 0x288   :  { %190 = vmatmul.f32.vlgmr.msra.gmra.mxu2 %v136_v60  ;;  %v137_v61 = vand.u32 4294901760, %v136_v60  ;;  %v290_v62 = vand.u32 4294901760, %v289_v59 }
 0x289   :  { %389 = vmatpush.msra.mxu2 %v314_v47 }
 0x28a   :  { %214 = vmatmul.f32.vlgmr.msra.gmra.mxu3 %v137_v61  ;;  %v138_v63 = vsub.f32 %v136_v60, %v137_v61  ;;  %v291_v0 = vsub.f32 %v289_v59, %v290_v62 }
 0x28b   :  { %411 = vmatpush.msra.mxu3 %v286_v42 }
 0x28c   :  { %v139_v1 = vand.u32 4294901760, %v138_v63  ;;  %v292_v2 = vand.u32 4294901760, %v291_v0 }
 0x28e   :  { %140 = vmatmul.f32.vlgmr.msra.gmra.mxu0 %v139_v1  ;;  %260 = vmatmul.f32.vlgmr.msrb.gmra.mxu1 %v135_v58 }
 0x28f   :  { %340 = vmatpush.msra.mxu0 %v313_v46 }
 0x290   :  { %293 = vmatmul.f32.vlgmr.msrb.gmra.mxu2 %v292_v2 }
 0x292   :  { %319 = vmatmul.f32.vlgmr.msrb.gmra.mxu3 %v288_v57 }
 0x296   :  { %238 = vmatmul.f32.vlgmr.msrb.gmra.mxu0 %v135_v58  ;;  %367 = vmatmul.f32.vlgmr.msra.gmra.mxu1 %v290_v62 }
 0x298   :  { %391 = vmatmul.f32.vlgmr.msra.gmra.mxu2 %v288_v57 }
 0x29a   :  { %413 = vmatmul.f32.vlgmr.msra.gmra.mxu3 %v288_v57 }
 0x29e   :  { %343 = vmatmul.f32.vlgmr.msra.gmra.mxu0 %v289_v59 }
 0x303   :  { %v167_v3 = vpop.f32.mrf.mxu1 }
 0x30b   :  { %v141_v4 = vpop.f32.mrf.mxu0  ;;  %v191_v5 = vpop.f32.mrf.mxu2 }
 0x30c   :  { %v261_v7 = vpop.f32.mrf.mxu1  ;;  %v168_v10 = vadd.f32 %v167_v3, %v141_v4 }
 0x30d   :  { %v215_v6 = vpop.f32.mrf.mxu3 }
 0x30e   :  { %v192_v12 = vadd.f32 %v191_v5, %v168_v10 }
 0x310   :  { %v216_v17 = vadd.f32 %v215_v6, %v192_v12 }
 0x313   :  { %v239_v8 = vpop.f32.mrf.mxu0  ;;  %v294_v9 = vpop.f32.mrf.mxu2 }
 0x314   :  { %v368_v16 = vpop.f32.mrf.mxu1  ;;  %v240_v20 = vadd.f32 %v239_v8, %v216_v17 }
 0x315   :  { %v320_v11 = vpop.f32.mrf.mxu3 }
 0x316   :  { %v321_v13 = vadd.f32 %v320_v11, %v294_v9  ;;  %v262_v24 = vadd.f32 %v261_v7, %v240_v20 }
 0x31b   :  { %v344_v14 = vpop.f32.mrf.mxu0  ;;  %v392_v19 = vpop.f32.mrf.mxu2 }
 0x31c   :  { %v345_v15 = vadd.f32 %v344_v14, %v321_v13 }
 0x31d   :  { %v414_v22 = vpop.f32.mrf.mxu3 }
 0x31e   :  { %v369_v18 = vadd.f32 %v368_v16, %v345_v15 }
 0x320   :  { %v393_v21 = vadd.f32 %v392_v19, %v369_v18 }
 0x322   :  { %v415_v23 = vadd.f32 %v414_v22, %v393_v21 }
 0x324   :  { %v419_v25 = vrot.slane %v415_v23, 7 }
 0x326   :  { %v420_v26 = vsel %vm66_vm1, %v419_v25, %v262_v24 }
 0x327   :  { %423 = vst.msk [vmem:[#allocation7] sm:$0x3] %vm422_vm4, %v420_v26 }
 0x328   :  { %437 = dma.vmem_to_hbm [thread:$0]  %s433_s27, 32, %s435_s30, [#allocation4]  }
 0x329   :  { %578 = dma.done.wait [#allocation4], 32  }
 0x32a   :  { %579 = vsyncadd [#allocation4], 4294967264 }
 0x32b   :  { %580 = dma.done.wait [#allocation9], 32  }
 0x32c   :  { %581 = vsyncadd [#allocation9], 4294967264 }
 0x32d   :  { %457 = vsyncpa [#allocation3], 1 }
 0x32e   :  { %458 = vsyncpa [#allocation6], 1 }
 0x32f   :  { %459 = vsyncpa [#allocation4], 1 }
 0x330   :  { %460 = vsyncpa [#allocation9], 1 }

</bundles_post_ra>
